<compile_context>
chip_gen: v7x
topology: tpu7x:2x2x1
jax: 0.10.0
libtpu: 0.0.40
codegen_flags: <defaults>
</compile_context>

<pallas_src>
import jax
import jax.numpy as jnp
from jax import lax
from jax.experimental import pallas as pl
from jax.experimental.pallas import tpu as pltpu

# MXU-native operand dtype (accumulation is always f32 via preferred_element_type).
MXU_DTYPE = jnp.bfloat16

# Max tile sizes.  bf16 operands -> sublane alignment of 16 on the token axis.
_TM_FWD, _TN_FWD, _TK_FWD = 256, 1024, 1024
_TM_UPD = 256
_TN_UPD = 128          # small out-col tile: VMEM footprint + >=2 parallel tiles on v7x
_VMEM_LIMIT = 64 * 1024 * 1024   # > v5e(16M)/v6e,v7x(32M) scoped defaults; <= v7x physical


def _round_up(x, m):
    return -(-x // m) * m


def _tiles(dim, max_tile, align):
    """Return (padded_dim, tile) with tile | padded_dim and tile % align == 0."""
    d = _round_up(dim, align)
    if d <= max_tile:
        return d, d
    d = _round_up(d, max_tile)
    return d, max_tile


def _pick_divisor_tile(dp, max_tile, align):
    """Largest t <= max_tile, multiple of align, dividing dp (dp % align == 0)."""
    t = max(align, min(dp, (max_tile // align) * align))
    while dp % t:
        t -= align
    return t


def _pad2d(a, rows, cols):
    r, c = a.shape
    if r == rows and c == cols:
        return a
    return jnp.pad(a, ((0, rows - r), (0, cols - c)))


# ---------------------------------------------------------------------------
# Forward kernels: o = x @ W_bf16   (bf16 operands, f32 output)
# ---------------------------------------------------------------------------
def _fwd_matmul_direct_kernel(x_ref, w_ref, o_ref):
    # Single K tile: write the MXU result straight to the output block
    # (no f32 VMEM accumulator round trip).
    o_ref[...] = jnp.dot(
        x_ref[...], w_ref[...], preferred_element_type=jnp.float32
    ).astype(o_ref.dtype)


def _fwd_matmul_acc_kernel(x_ref, w_ref, o_ref, acc_ref):
    k = pl.program_id(2)

    @pl.when(k == 0)
    def _():
        acc_ref[...] = jnp.zeros_like(acc_ref)

    acc_ref[...] += jnp.dot(
        x_ref[...], w_ref[...], preferred_element_type=jnp.float32
    )

    @pl.when(k == pl.num_programs(2) - 1)
    def _():
        o_ref[...] = acc_ref[...].astype(o_ref.dtype)


def linear_memory_forward(x2d, w_bf, dim_out):
    """x2d: (M, K) any float dtype, w_bf: (Kp, Np) bf16 -> (M, dim_out) f32."""
    M, K = x2d.shape
    Kp, Np = w_bf.shape
    assert K <= Kp and dim_out <= Np and Kp % 128 == 0 and Np % 128 == 0

    Mp, tm = _tiles(M, _TM_FWD, 16)
    tk = _pick_divisor_tile(Kp, _TK_FWD, 128)
    tn = _pick_divisor_tile(Np, _TN_FWD, 128)

    # Lane-pad x once (bf16 copy; no-op when already aligned).  In-kernel
    # ragged-tile masking would remove even this — not needed at these sizes.
    xp = _pad2d(x2d.astype(MXU_DTYPE), Mp, Kp)

    if tk == Kp:
        out = pl.pallas_call(
            _fwd_matmul_direct_kernel,
            out_shape=jax.ShapeDtypeStruct((Mp, Np), jnp.float32),
            grid_spec=pltpu.PrefetchScalarGridSpec(
                num_scalar_prefetch=0,
                grid=(Mp // tm, Np // tn),
                in_specs=[
                    pl.BlockSpec((tm, Kp), lambda i, j: (i, 0)),
                    pl.BlockSpec((Kp, tn), lambda i, j: (0, j)),
                ],
                out_specs=pl.BlockSpec((tm, tn), lambda i, j: (i, j)),
            ),
            compiler_params=pltpu.CompilerParams(
                dimension_semantics=("parallel", "parallel"),
                vmem_limit_bytes=_VMEM_LIMIT,
            ),
        )(xp, w_bf)
    else:
        out = pl.pallas_call(
            _fwd_matmul_acc_kernel,
            out_shape=jax.ShapeDtypeStruct((Mp, Np), jnp.float32),
            grid_spec=pltpu.PrefetchScalarGridSpec(
                num_scalar_prefetch=0,
                grid=(Mp // tm, Np // tn, Kp // tk),
                in_specs=[
                    pl.BlockSpec((tm, tk), lambda i, j, k: (i, k)),
                    pl.BlockSpec((tk, tn), lambda i, j, k: (k, j)),
                ],
                out_specs=pl.BlockSpec((tm, tn), lambda i, j, k: (i, j)),
                scratch_shapes=[pltpu.VMEM((tm, tn), jnp.float32)],
            ),
            compiler_params=pltpu.CompilerParams(
                dimension_semantics=("parallel", "parallel", "arbitrary"),
                vmem_limit_bytes=_VMEM_LIMIT,
            ),
        )(xp, w_bf)
    return out[:M, :dim_out]


# ---------------------------------------------------------------------------
# Fused kernel: grad of MSE(x@W, target) w.r.t. W  +  memory update, in place.
#   grid = (N tiles [parallel], token tiles [arbitrary reduction, innermost])
#   acc  += x_tile^T @ (x_tile @ W_tile - target_tile)      (per token tile)
#   epilogue (last token tile):
#     s_new = eta*s + lr*grad_scale*acc
#     w_new = (1-alpha)*W + s_new          (+ bf16 shadow of w_new for forward)
# ---------------------------------------------------------------------------
def _fused_grad_update_kernel(scalars_ref,           # SMEM (4,): lr, eta, alpha, grad_scale
                              x_ref,                 # (tm, Kp) bf16
                              t_ref,                 # (tm, tn) bf16
                              w_ref,                 # (Kp, tn) f32
                              s_ref,                 # (Kp, tn) f32
                              w_out_ref,             # (Kp, tn) f32   aliased with w
                              s_out_ref,             # (Kp, tn) f32   aliased with s
                              wbf_out_ref,           # (Kp, tn) bf16  forward shadow
                              acc_ref):              # VMEM (Kp, tn) f32
    i = pl.program_id(1)  # token-reduction axis (innermost)

    @pl.when(i == 0)
    def _():
        acc_ref[...] = jnp.zeros_like(acc_ref)

    x_bf = x_ref[...]                                # already bf16 in HBM/VMEM
    # residual r = x @ W - target for this (token, out-col) tile
    r = jnp.dot(x_bf, w_ref[...].astype(MXU_DTYPE),
                preferred_element_type=jnp.float32) - t_ref[...].astype(jnp.float32)
    # grad contribution: contract the token axis of x and r (x^T @ r); no
    # explicit transpose in the kernel body.
    acc_ref[...] += lax.dot_general(
        x_bf, r.astype(MXU_DTYPE),
        dimension_numbers=(((0,), (0,)), ((), ())),
        preferred_element_type=jnp.float32,
    )

    @pl.when(i == pl.num_programs(1) - 1)
    def _():
        lr = scalars_ref[0]
        eta = scalars_ref[1]
        alpha = scalars_ref[2]
        gscale = scalars_ref[3]
        # Elementwise epilogue stays f32 (v5e VPU has no bf16 path).
        s_new = eta * s_ref[...] + (lr * gscale) * acc_ref[...]
        w_new = (1.0 - alpha) * w_ref[...] + s_new
        s_out_ref[...] = s_new
        w_out_ref[...] = w_new
        wbf_out_ref[...] = w_new.astype(MXU_DTYPE)   # forward-operand shadow


def fused_mse_grad_memory_update(x2d, target2d, w_pad, s_pad, *,
                                 lr, eta, alpha, dim_out):
    """Returns (w_new_pad f32, s_new_pad f32, w_new_pad bf16)."""
    M, K = x2d.shape
    Mt, N = target2d.shape
    Kp, Np = w_pad.shape
    assert Mt == M and N == dim_out and s_pad.shape == (Kp, Np)
    assert Kp % 128 == 0 and Np % 128 == 0

    Mp, tm = _tiles(M, _TM_UPD, 16)
    tn = _pick_divisor_tile(Np, _TN_UPD, 128)
    # TODO(synk): for very large dim_in (Kp ~ 8k+), the (Kp, tn)-resident
    # blocks approach the v7x VMEM ceiling; a two-level K tiling
    # (pltpu.emit_pipeline) would be required — not needed at these sizes.

    xp = _pad2d(x2d.astype(MXU_DTYPE), Mp, Kp)
    tp = _pad2d(target2d.astype(MXU_DTYPE), Mp, Np)
    grad_scale = 2.0 / float(M * N)  # d/dW of mean((x@W - target)^2), unpadded M,N
    scalars = jnp.asarray([lr, eta, alpha, grad_scale], jnp.float32)

    kn_spec = pl.BlockSpec((Kp, tn), lambda j, i: (0, j))
    w_new, s_new, wbf_new = pl.pallas_call(
        _fused_grad_update_kernel,
        out_shape=(
            jax.ShapeDtypeStruct((Kp, Np), jnp.float32),
            jax.ShapeDtypeStruct((Kp, Np), jnp.float32),
            jax.ShapeDtypeStruct((Kp, Np), MXU_DTYPE),
        ),
        grid_spec=pltpu.PrefetchScalarGridSpec(
            num_scalar_prefetch=0,
            grid=(Np // tn, Mp // tm),  # (out-col tiles, token-reduction tiles)
            in_specs=[
                pl.BlockSpec(memory_space=pltpu.MemorySpace.SMEM),  # scalars
                pl.BlockSpec((tm, Kp), lambda j, i: (i, 0)),        # x (bf16)
                pl.BlockSpec((tm, tn), lambda j, i: (i, j)),        # target (bf16)
                kn_spec,                                            # W (f32)
                kn_spec,                                            # surprise (f32)
            ],
            out_specs=(kn_spec, kn_spec, kn_spec),
            scratch_shapes=[pltpu.VMEM((Kp, tn), jnp.float32)],
        ),
        # In-place update of W and the surprise buffer (true in-place when
        # donated under an outer jit).
        input_output_aliases={3: 0, 4: 1},
        compiler_params=pltpu.CompilerParams(
            dimension_semantics=("parallel", "arbitrary"),
            vmem_limit_bytes=_VMEM_LIMIT,
        ),
    )(scalars, xp, tp, w_pad, s_pad)
    return w_new, s_new, wbf_new


# ---------------------------------------------------------------------------
# Small wrapper mimicking MemoryModule with a linear-memory realization.
# ---------------------------------------------------------------------------
class LinearMemory:
    """Concrete MemoryModule: M(x) = x @ W.

    W and its surprise buffer are stored lane-padded to (Kp, Np) multiples of
    128 so every Pallas store is lane-dense; zero padding is invariant under
    the update rule, so the logical (dim_in, dim_out) view is exact.  A bf16
    shadow of W is kept as the forward matmul operand.
    """

    def __init__(self, dim_in, dim_out, lr, key):
        self.lr = float(lr)
        self.dim_in = dim_in
        self.dim_out = dim_out
        self._Kp = _round_up(dim_in, 128)
        self._Np = _round_up(dim_out, 128)
        # construct_layers(): one weight "W"; surprise buffer zero-initialized
        # (matches register_buffer(..., torch.zeros_like(weight))).
        w = (jax.random.normal(key, (dim_in, dim_out), jnp.float32)
             * (1.0 / jnp.sqrt(dim_in)))
        self._W = _pad2d(w, self._Kp, self._Np)
        self._S = jnp.zeros((self._Kp, self._Np), jnp.float32)
        self._Wbf = self._W.astype(MXU_DTYPE)   # forward-operand shadow

    # logical (unpadded) views
    @property
    def W(self):
        return self._W[: self.dim_in, : self.dim_out]

    @property
    def W_surprise_tpast(self):
        return self._S[: self.dim_in, : self.dim_out]

    def forward(self, x):
        # x: (batch, seq, dim_in) -> (batch, seq, dim_out)
        B, S, D = x.shape
        assert D == self.dim_in
        out2d = linear_memory_forward(x.reshape(B * S, D), self._Wbf, self.dim_out)
        return out2d.reshape(B, S, self.dim_out)

    def update(self, x, target, eta, alpha):
        # torch.autograd.grad(MSE(M(x), target), W) analogue, fused in-kernel.
        # TODO(synk): MemoryModule.update accepts an arbitrary autograd loss;
        # only the MSE surprise-loss gradient is fused here.  Other losses
        # would need jax.grad outside the kernel feeding the same epilogue.
        B, S, D = x.shape
        x2d = x.reshape(B * S, D)
        t2d = target.reshape(B * S, self.dim_out)
        w_new, s_new, wbf_new = fused_mse_grad_memory_update(
            x2d, t2d, self._W, self._S,
            lr=self.lr, eta=float(eta), alpha=float(alpha),
            dim_out=self.dim_out,
        )
        self._W, self._S, self._Wbf = w_new, s_new, wbf_new
        return self.W, self.W_surprise_tpast


if __name__ == "__main__":
    key = jax.random.PRNGKey(0)
    k_w, k_x, k_t = jax.random.split(key, 3)

    batch, seq, dim_in, dim_out = 2, 8, 32, 32
    lr, eta, alpha = 0.1, 0.9, 0.01

    mem = LinearMemory(dim_in, dim_out, lr, k_w)
    x = jax.random.normal(k_x, (batch, seq, dim_in), jnp.float32)
    target = jax.random.normal(k_t, (batch, seq, dim_out), jnp.float32)

    # bf16-quantized (MXU / HBM operand) reference helper, f32 math.
    def q(a):
        return a.astype(MXU_DTYPE).astype(jnp.float32)

    # ---- forward (bf16-operand MXU matmul kernel using the W shadow) ----
    y = jax.block_until_ready(mem.forward(x))
    y_ref = jnp.einsum("bsd,de->bse", q(x), q(mem.W))
    assert jnp.allclose(y, y_ref, atol=1e-3, rtol=1e-3), "forward mismatch"

    # ---- fused grad + memory update kernel ----
    w_before = mem.W
    s_before = mem.W_surprise_tpast
    x2d_q = q(x).reshape(-1, dim_in)
    t2d_q = q(target).reshape(-1, dim_out)
    resid = x2d_q @ q(w_before) - t2d_q
    grad_ref = (2.0 / (x2d_q.shape[0] * dim_out)) * (x2d_q.T @ q(resid))
    s_expect = eta * s_before + lr * grad_ref
    w_expect = (1.0 - alpha) * w_before + s_expect

    w_new, s_new = mem.update(x, target, eta, alpha)
    w_new = jax.block_until_ready(w_new)

    assert jnp.allclose(s_new, s_expect, atol=1e-3, rtol=1e-2), "surprise mismatch"
    assert jnp.allclose(w_new, w_expect, atol=1e-3, rtol=1e-2), "weight update mismatch"

    # bf16 forward shadow tracks the updated f32 weights exactly.
    assert jnp.array_equal(mem._Wbf, mem._W.astype(MXU_DTYPE)), "W shadow mismatch"

    # Padding invariance: padded region of W stays exactly zero.
    assert float(jnp.abs(mem._W[dim_in:, :]).max(initial=0.0)) == 0.0
    assert float(jnp.abs(mem._W[:, dim_out:]).max(initial=0.0)) == 0.0

    # ---- forward again through the updated bf16 shadow ----
    y2 = jax.block_until_ready(mem.forward(x))
    y2_ref = jnp.einsum("bsd,de->bse", q(x), q(mem.W))
    assert jnp.allclose(y2, y2_ref, atol=1e-3, rtol=1e-3), "post-update forward mismatch"

    print("KERNEL_OK")
</pallas_src>

<mosaic_0001>
module attributes {stable_mosaic.version = 11 : i64} {
  func.func @_fwd_matmul_direct_kernel(%arg0: i32, %arg1: i32, %arg2: memref<16x128xbf16, #tpu.memory_space<vmem>>, %arg3: memref<128x128xbf16, #tpu.memory_space<vmem>>, %arg4: memref<16x128xf32, #tpu.memory_space<vmem>>) attributes {dimension_semantics = [#tpu.dimension_semantics<parallel>, #tpu.dimension_semantics<parallel>], iteration_bounds = array<i64: 1, 1>, scalar_prefetch = 0 : i64, scratch_operands = 0 : i64, tpu.core_type = #tpu.core_type<tc>, window_params = [{transform_indices = @transform_0, window_bounds = array<i64: 16, 128>}, {transform_indices = @transform_1, window_bounds = array<i64: 128, 128>}, {transform_indices = @transform_2, window_bounds = array<i64: 16, 128>}]} {
    %c0 = arith.constant 0 : index
    %c0_0 = arith.constant 0 : index
    %0 = vector.load %arg2[%c0, %c0_0] : memref<16x128xbf16, #tpu.memory_space<vmem>>, vector<16x128xbf16>
    %c0_1 = arith.constant 0 : index
    %c0_2 = arith.constant 0 : index
    %1 = vector.load %arg3[%c0_1, %c0_2] : memref<128x128xbf16, #tpu.memory_space<vmem>>, vector<128x128xbf16>
    %cst = arith.constant dense<0.000000e+00> : vector<16x128xf32>
    %2 = tpu.matmul %0, %1, %cst {dimension_numbers = #tpu.dot_dimension_numbers<[1], [0], [0], [1], [0, 0, 1, 1], [], []>} : vector<16x128xbf16>, vector<128x128xbf16>, vector<16x128xf32> -> vector<16x128xf32>
    %c0_3 = arith.constant 0 : index
    %c0_4 = arith.constant 0 : index
    %3 = vector.load %arg4[%c0_3, %c0_4] : memref<16x128xf32, #tpu.memory_space<vmem>>, vector<16x128xf32>
    tpu.vector_store %arg4[%c0_3, %c0_4], %2 {strides = array<i32>} : memref<16x128xf32, #tpu.memory_space<vmem>>, vector<16x128xf32>,
    return
  }
  func.func @transform_0(%arg0: i32, %arg1: i32) -> (i32, i32) {
    %c0_i32 = arith.constant 0 : i32
    %c0_i32_0 = arith.constant 0 : i32
    return %arg0, %c0_i32 : i32, i32
  }
  func.func @transform_1(%arg0: i32, %arg1: i32) -> (i32, i32) {
    %c0_i32 = arith.constant 0 : i32
    %c0_i32_0 = arith.constant 0 : i32
    return %c0_i32, %arg1 : i32, i32
  }
  func.func @transform_2(%arg0: i32, %arg1: i32) -> (i32, i32) {
    %c0_i32 = arith.constant 0 : i32
    return %arg0, %arg1 : i32, i32
  }
}

</mosaic_0001>

<bundles_post_ra>
// kernel: tpu_custom_call.1
= control target key start
LH: loop header
LB: loop body
LE: loop exit
PB: predicated region body
PF: predicated region fallthrough
CT: control target
= control target key end

     0   :  { %7 = vsyncpa [#allocation3], 0  ;;  %s362_s0 = inlined_call_operand.hbm [shape: bf16[16,128], index: 0, kind: input, shape index: {}]   ;;  %s363_s1 = inlined_call_operand.hbm [shape: bf16[128,128], index: 1, kind: input, shape index: {}]   ;;  %s364_s2 = inlined_call_operand.hbm [shape: f32[16,128], index: 2, kind: output, shape index: {}]  }
   0x1   :  { %8 = vsyncpa [#allocation6], 0 }
   0x2   :  { %9 = vsyncpa [#allocation4], 0  ;;  %s302_s9 = smov [#allocation2]   ;;  %s230_s13 = scalar_lea.hbm %s362_s0, 128 }
   0x3   :  { %s15_s10 = sshll.u32 %s302_s9, 4  ;;  %p231_p0 = scmp.ne.s32.totalorder %s362_s0, %s230_s13  ;;  %s16_s10 = int_to_ptr.vmem [resolvable:$true] %s15_s10 }
   0x4   :  { %p234_p1 = scmp.lt.u32.totalorder %s230_s13, %s362_s0 }
   0x6   :  { %p236_p2 = pnand %p234_p1, %p231_p0 }
   0x8   :  { %239 = shalt.err (!%p236_p2)
}
   0x9   :  { %s240_s18 = scalar_lea.vmem %s16_s10, 128  ;;  %p245_p4 = scmp.lt.s32.totalorder %s16_s10, %s16_s10 }
   0xa   :  { %p241_p3 = scmp.ne.s32.totalorder %s16_s10, %s240_s18  ;;  %p246_p5 = scmp.lt.s32.totalorder %s240_s18, %s240_s18 }
   0xc   :  { %p247_p6 = por %p246_p5, %p245_p4 }
   0xe   :  { %p248_p7 = pnand %p247_p6, %p241_p3 }
  0x10   :  { %251 = shalt.err (!%p248_p7)
}
  0x11   :  { %s303_s19 = smov 64   ;;  %s304_s20 = smov 4  }
  0x12   :  { %21 = dma.hbm_to_vmem [thread:$0]  %s362_s0, 128, %s16_s10, [#allocation3], %s303_s19, %s303_s19, %s304_s20  }
  0x13   :  { %s305_s23 = smov [#allocation5]   ;;  %s252_s27 = scalar_lea.hbm %s363_s1, 1024 }
  0x14   :  { %s27_s24 = sshll.u32 %s305_s23, 4  ;;  %p253_p8 = scmp.ne.s32.totalorder %s363_s1, %s252_s27  ;;  %s28_s24 = int_to_ptr.vmem [resolvable:$true] %s27_s24 }
  0x15   :  { %p256_p9 = scmp.lt.u32.totalorder %s252_s27, %s363_s1 }
  0x17   :  { %p258_p10 = pnand %p256_p9, %p253_p8 }
  0x19   :  { %261 = shalt.err (!%p258_p10)
}
  0x1a   :  { %s262_s4 = scalar_lea.vmem %s28_s24, 1024  ;;  %p267_p12 = scmp.lt.s32.totalorder %s28_s24, %s28_s24 }
  0x1b   :  { %p263_p11 = scmp.ne.s32.totalorder %s28_s24, %s262_s4  ;;  %p268_p13 = scmp.lt.s32.totalorder %s262_s4, %s262_s4 }
  0x1d   :  { %p269_p0 = por %p268_p13, %p267_p12 }
  0x1f   :  { %p270_p1 = pnand %p269_p0, %p263_p11 }
  0x21   :  { %273 = shalt.err (!%p270_p1)
}
  0x22   :  { %33 = dma.hbm_to_vmem [thread:$0]  %s363_s1, 1024, %s28_s24, [#allocation6], %s303_s19, %s303_s19, %s304_s20  }
  0x23   :  { %296 = dma.done.wait [#allocation3], 128  }
  0x24   :  { %297 = vsyncadd [#allocation3], 4294967168 }
  0x25   :  { %298 = dma.done.wait [#allocation6], 1024  }
  0x26   :  { %299 = vsyncadd [#allocation6], 4294966272  ;;  %v306_v0 = vmov 0.0   ;;  %vm307_vm0 = vmmov 0   ;;  %v221_v1 = vld [vmem:[#allocation5] sm:$0xff]   ;;  %v222_v2 = vld [vmem:[#allocation5 + $0x8] sm:$0xff]  }
  0x27   :  { %192 = vmatprep.subr.bf16.mxu0 %v306_v0  ;;  %208 = vmatprep.mubr.msk.bf16.mxu0 %vm307_vm0, %v306_v0  ;;  %v223_v3 = vld [vmem:[#allocation5 + $0x10] sm:$0xff]   ;;  %v224_v4 = vld [vmem:[#allocation5 + $0x18] sm:$0xff]   ;;  %v225_v5 = vld [vmem:[#allocation5 + $0x20] sm:$0xff]   ;;  %s308_s1 = smov [#allocation7]  }
  0x28   :  { %193 = vmatpush3.bf16.msra.mxu0 %v221_v1  ;;  %v226_v6 = vld [vmem:[#allocation5 + $0x28] sm:$0xff]   ;;  %v227_v7 = vld [vmem:[#allocation5 + $0x30] sm:$0xff]   ;;  %v228_v8 = vld [vmem:[#allocation5 + $0x38] sm:$0xff]   ;;  %s161_s6 = sshll.u32 %s308_s1, 4  ;;  %s162_s6 = int_to_ptr.vmem [resolvable:$true] %s161_s6 }
  0x29   :  { %194 = vmatprep.subr.bf16.mxu0 %v306_v0  ;;  %v229_v9 = vld [vmem:[#allocation2] sm:$0xff]   ;;  %s274_s7 = scalar_lea.vmem %s162_s6, 256  ;;  %p279_p3 = scmp.lt.s32.totalorder %s162_s6, %s162_s6 }
  0x2a   :  { %p275_p2 = scmp.ne.s32.totalorder %s162_s6, %s274_s7  ;;  %p280_p4 = scmp.lt.s32.totalorder %s274_s7, %s274_s7 }
  0x2c   :  { %195 = vmatpush3.bf16.msra.mxu0 %v222_v2  ;;  %p281_p5 = por %p280_p4, %p279_p3 }
  0x2d   :  { %196 = vmatprep.subr.bf16.mxu0 %v306_v0 }
  0x2e   :  { %p282_p6 = pnand %p281_p5, %p275_p2 }
  0x30   :  { %197 = vmatpush3.bf16.msra.mxu0 %v223_v3 }
  0x31   :  { %198 = vmatprep.subr.bf16.mxu0 %v306_v0 }
  0x34   :  { %199 = vmatpush3.bf16.msra.mxu0 %v224_v4 }
  0x35   :  { %200 = vmatprep.subr.bf16.mxu0 %v306_v0 }
  0x38   :  { %201 = vmatpush3.bf16.msra.mxu0 %v225_v5 }
  0x39   :  { %202 = vmatprep.subr.bf16.mxu0 %v306_v0 }
  0x3c   :  { %203 = vmatpush3.bf16.msra.mxu0 %v226_v6 }
  0x3d   :  { %204 = vmatprep.subr.bf16.mxu0 %v306_v0 }
  0x40   :  { %205 = vmatpush3.bf16.msra.mxu0 %v227_v7 }
  0x41   :  { %206 = vmatprep.subr.bf16.mxu0 %v306_v0 }
  0x44   :  { %207 = vmatpush3.bf16.msra.mxu0 %v228_v8 }
  0x47   :  { %209 = vmatmul.mubr.bf16.vlgmr.msra.gmra.mrb[0].mxu0 %v229_v9 }
 0x11a   :  { %v147_v10 = vpop.f32.mrb[0].mxu0 }
 0x11b   :  { %154 = vst [vmem:[#allocation7] sm:$0xff] %v147_v10  ;;  %v210_v11 = vpop.f32.mrb[1].mxu0 }
 0x11c   :  { %v150_v12 = vpop.f32.mrb[2].mxu0 }
 0x11d   :  { %155 = vst [vmem:[#allocation7 + $0x8] sm:$0xff] %v150_v12  ;;  %v211_v13 = vpop.f32.mrb[3].mxu0 }
 0x11e   :  { %285 = shalt.err (!%p282_p6)
}
 0x11f   :  { %s286_s10 = scalar_lea.hbm %s364_s2, 256 }
 0x120   :  { %p287_p7 = scmp.ne.s32.totalorder %s364_s2, %s286_s10  ;;  %p290_p8 = scmp.lt.u32.totalorder %s286_s10, %s364_s2 }
 0x122   :  { %p292_p9 = pnand %p290_p8, %p287_p7 }
 0x124   :  { %295 = shalt.err (!%p292_p9)
}
 0x125   :  { %s309_s15 = smov 128   ;;  %s310_s16 = smov 8  }
 0x126   :  { %167 = dma.vmem_to_hbm [thread:$0]  %s162_s6, 256, %s364_s2, [#allocation4], %s309_s15, %s309_s15, %s310_s16  }
 0x127   :  { %300 = dma.done.wait [#allocation4], 256  }
 0x128   :  { %301 = vsyncadd [#allocation4], 4294967040 }
 0x129   :  { %171 = vsyncpa [#allocation3], 1 }
 0x12a   :  { %172 = vsyncpa [#allocation6], 1 }
 0x12b   :  { %173 = vsyncpa [#allocation4], 1 }

</bundles_post_ra>
